<compile_context>
chip_gen: v6e
topology: v6e:2x2x1
jax: 0.10.0
libtpu: 0.0.40
codegen_flags: <defaults>
</compile_context>

<pallas_src>
import jax
import jax.numpy as jnp
from jax.experimental import pallas as pl
from jax.experimental.pallas import tpu as pltpu


def _round_up(n: int, m: int) -> int:
    return ((n + m - 1) // m) * m


def mlp_kernel(x_ref, w1_ref, b1_ref, w2_ref, b2_ref, w3_ref, b3_ref, o_ref):
    # Activations / biases in f32; weights arrive as bf16 and are upcast for the
    # f32-accumulating MXU matmuls.
    x = x_ref[...]

    # Layer 1: Linear + ReLU
    w1 = w1_ref[...].astype(jnp.float32)
    h1 = jnp.dot(x, w1, preferred_element_type=jnp.float32) + b1_ref[...]
    h1 = jnp.maximum(h1, 0.0)

    # Layer 2: Linear + ReLU
    w2 = w2_ref[...].astype(jnp.float32)
    h2 = jnp.dot(h1, w2, preferred_element_type=jnp.float32) + b2_ref[...]
    h2 = jnp.maximum(h2, 0.0)

    # Layer 3: Linear (logits)
    w3 = w3_ref[...].astype(jnp.float32)
    z = jnp.dot(h2, w3, preferred_element_type=jnp.float32) + b3_ref[...]

    # LogSoftmax over the last axis, numerically stable (all f32 on the VPU/EUP).
    m = jnp.max(z, axis=-1, keepdims=True)
    zs = z - m
    lse = jnp.log(jnp.sum(jnp.exp(zs), axis=-1, keepdims=True))
    o_ref[...] = zs - lse


def mlp_forward(x, w1, b1, w2, b2, w3, b3):
    B, K = x.shape
    H1 = w1.shape[1]
    H2 = w2.shape[1]
    OUT = w3.shape[1]

    # --- wrapper-side layout prep -------------------------------------------------
    # Pad the contraction dim 784 -> 896 (7*128) for lane-dense vregs / aligned DMA.
    K_pad = _round_up(K, 128)
    if K_pad != K:
        x = jnp.pad(x, ((0, 0), (0, K_pad - K)))
        w1 = jnp.pad(w1, ((0, K_pad - K), (0, 0)))

    # Batch tile: 128 rows saturates the MXU row dim on v5e and keeps the x tile tiny
    # (128*896*4 B ~ 0.45 MB per double-buffered slot -> safe for v7x's 64 MiB VMEM).
    tm = 128 if B >= 128 else _round_up(B, 8)
    B_pad = _round_up(B, tm)
    if B_pad != B:
        x = jnp.pad(x, ((0, B_pad - B), (0, 0)))

    # Weights in bf16 (halves weight HBM traffic); biases stay f32.
    w1 = w1.astype(jnp.bfloat16)
    w2 = w2.astype(jnp.bfloat16)
    w3 = w3.astype(jnp.bfloat16)

    grid = (B_pad // tm,)

    def const_spec(shape):
        # Full-array block, constant index_map -> DMA'd once, VMEM-resident across steps.
        return pl.BlockSpec(shape, lambda i: tuple(0 for _ in shape))

    cost = pl.CostEstimate(
        flops=2 * B_pad * (K_pad * H1 + H1 * H2 + H2 * OUT),
        transcendentals=B_pad * (OUT + 1),  # exp per logit + log per row
        bytes_accessed=(
            x.size * 4
            + (w1.size + w2.size + w3.size) * 2
            + (b1.size + b2.size + b3.size) * 4
            + B_pad * OUT * 4
        ),
    )

    out = pl.pallas_call(
        mlp_kernel,
        out_shape=jax.ShapeDtypeStruct((B_pad, OUT), jnp.float32),
        grid=grid,
        in_specs=[
            pl.BlockSpec((tm, K_pad), lambda i: (i, 0)),  # x tile streams through
            const_spec(w1.shape), const_spec(b1.shape),
            const_spec(w2.shape), const_spec(b2.shape),
            const_spec(w3.shape), const_spec(b3.shape),
        ],
        out_specs=pl.BlockSpec((tm, OUT), lambda i: (i, 0)),
        compiler_params=pltpu.CompilerParams(
            dimension_semantics=("parallel",)),  # batch tiles are independent (2 TCs on v7x)
        cost_estimate=cost,
    )(x, w1, b1, w2, b2, w3, b3)

    return out[:B]


def reference_forward(x, w1, b1, w2, b2, w3, b3):
    # Reference uses the same bf16-stored weights (upcast to f32) that the kernel sees.
    w1 = w1.astype(jnp.bfloat16).astype(jnp.float32)
    w2 = w2.astype(jnp.bfloat16).astype(jnp.float32)
    w3 = w3.astype(jnp.bfloat16).astype(jnp.float32)
    hi = jax.lax.Precision.HIGHEST
    h1 = jnp.maximum(jnp.dot(x, w1, precision=hi) + b1, 0.0)
    h2 = jnp.maximum(jnp.dot(h1, w2, precision=hi) + b2, 0.0)
    z = jnp.dot(h2, w3, precision=hi) + b3
    return jax.nn.log_softmax(z, axis=1)


if __name__ == "__main__":
    # Shapes implied by the module: input_size=784, hidden_sizes=[128, 64], output_size=10.
    batch = 8
    input_size = 784
    hidden_sizes = (128, 64)
    output_size = 10

    key = jax.random.PRNGKey(0)
    kx, k1, k2, k3, kb1, kb2, kb3 = jax.random.split(key, 7)

    x = jax.random.normal(kx, (batch, input_size), dtype=jnp.float32)

    # Deterministic parameter init (scaled normal); weights as (in, out).
    w1 = jax.random.normal(k1, (input_size, hidden_sizes[0]), jnp.float32) * (1.0 / jnp.sqrt(input_size))
    b1 = jax.random.normal(kb1, (1, hidden_sizes[0]), jnp.float32) * 0.01
    w2 = jax.random.normal(k2, (hidden_sizes[0], hidden_sizes[1]), jnp.float32) * (1.0 / jnp.sqrt(hidden_sizes[0]))
    b2 = jax.random.normal(kb2, (1, hidden_sizes[1]), jnp.float32) * 0.01
    w3 = jax.random.normal(k3, (hidden_sizes[1], output_size), jnp.float32) * (1.0 / jnp.sqrt(hidden_sizes[1]))
    b3 = jax.random.normal(kb3, (1, output_size), jnp.float32) * 0.01

    out = mlp_forward(x, w1, b1, w2, b2, w3, b3)
    out = jax.block_until_ready(out)

    ref = reference_forward(x, w1, b1, w2, b2, w3, b3)
    assert out.shape == (batch, output_size)
    # Tolerance covers f32-accumulation order differences; weight quantization is
    # identical on both sides (bf16 storage).
    assert jnp.allclose(out, ref, atol=2e-3, rtol=2e-3), "mismatch vs reference"

    print("KERNEL_OK")
</pallas_src>

<mosaic_0001>
module attributes {stable_mosaic.version = 11 : i64} {
  func.func @mlp_kernel(%arg0: i32, %arg1: memref<8x896xf32, #tpu.memory_space<vmem>>, %arg2: memref<896x128xbf16, #tpu.memory_space<vmem>>, %arg3: memref<1x128xf32, #tpu.memory_space<vmem>>, %arg4: memref<128x64xbf16, #tpu.memory_space<vmem>>, %arg5: memref<1x64xf32, #tpu.memory_space<vmem>>, %arg6: memref<64x10xbf16, #tpu.memory_space<vmem>>, %arg7: memref<1x10xf32, #tpu.memory_space<vmem>>, %arg8: memref<8x10xf32, #tpu.memory_space<vmem>>) attributes {dimension_semantics = [#tpu.dimension_semantics<parallel>], iteration_bounds = array<i64: 1>, scalar_prefetch = 0 : i64, scratch_operands = 0 : i64, tpu.core_type = #tpu.core_type<tc>, window_params = [{transform_indices = @transform_0, window_bounds = array<i64: 8, 896>}, {pipeline_mode = #tpu.pipeline_mode<synchronous>, transform_indices = @transform_1, window_bounds = array<i64: 896, 128>}, {pipeline_mode = #tpu.pipeline_mode<synchronous>, transform_indices = @transform_2, window_bounds = array<i64: 1, 128>}, {pipeline_mode = #tpu.pipeline_mode<synchronous>, transform_indices = @transform_3, window_bounds = array<i64: 128, 64>}, {pipeline_mode = #tpu.pipeline_mode<synchronous>, transform_indices = @transform_4, window_bounds = array<i64: 1, 64>}, {pipeline_mode = #tpu.pipeline_mode<synchronous>, transform_indices = @transform_5, window_bounds = array<i64: 64, 10>}, {pipeline_mode = #tpu.pipeline_mode<synchronous>, transform_indices = @transform_6, window_bounds = array<i64: 1, 10>}, {transform_indices = @transform_7, window_bounds = array<i64: 8, 10>}]} {
    %c0 = arith.constant 0 : index
    %c0_0 = arith.constant 0 : index
    %0 = vector.load %arg1[%c0, %c0_0] : memref<8x896xf32, #tpu.memory_space<vmem>>, vector<8x896xf32>
    %c0_1 = arith.constant 0 : index
    %c0_2 = arith.constant 0 : index
    %1 = vector.load %arg2[%c0_1, %c0_2] : memref<896x128xbf16, #tpu.memory_space<vmem>>, vector<896x128xbf16>
    %2 = arith.extf %1 : vector<896x128xbf16> to vector<896x128xf32>
    %cst = arith.constant dense<0.000000e+00> : vector<8x128xf32>
    %3 = tpu.matmul %0, %2, %cst {dimension_numbers = #tpu.dot_dimension_numbers<[1], [0], [0], [1], [0, 0, 1, 1], [], []>} : vector<8x896xf32>, vector<896x128xf32>, vector<8x128xf32> -> vector<8x128xf32>
    %c0_3 = arith.constant 0 : index
    %c0_4 = arith.constant 0 : index
    %4 = vector.load %arg3[%c0_3, %c0_4] : memref<1x128xf32, #tpu.memory_space<vmem>>, vector<1x128xf32>
    %5 = vector.broadcast %4 : vector<1x128xf32> to vector<8x128xf32>
    %6 = arith.addf %3, %5 : vector<8x128xf32>
    %cst_5 = arith.constant 0.000000e+00 : f32
    %7 = vector.broadcast %cst_5 : f32 to vector<8x128xf32>
    %8 = arith.maximumf %6, %7 : vector<8x128xf32>
    %c0_6 = arith.constant 0 : index
    %c0_7 = arith.constant 0 : index
    %9 = vector.load %arg4[%c0_6, %c0_7] : memref<128x64xbf16, #tpu.memory_space<vmem>>, vector<128x64xbf16>
    %10 = arith.extf %9 : vector<128x64xbf16> to vector<128x64xf32>
    %cst_8 = arith.constant dense<0.000000e+00> : vector<8x64xf32>
    %11 = tpu.matmul %8, %10, %cst_8 {dimension_numbers = #tpu.dot_dimension_numbers<[1], [0], [0], [1], [0, 0, 1, 1], [], []>} : vector<8x128xf32>, vector<128x64xf32>, vector<8x64xf32> -> vector<8x64xf32>
    %c0_9 = arith.constant 0 : index
    %c0_10 = arith.constant 0 : index
    %12 = vector.load %arg5[%c0_9, %c0_10] : memref<1x64xf32, #tpu.memory_space<vmem>>, vector<1x64xf32>
    %13 = vector.broadcast %12 : vector<1x64xf32> to vector<8x64xf32>
    %14 = arith.addf %11, %13 : vector<8x64xf32>
    %cst_11 = arith.constant 0.000000e+00 : f32
    %15 = vector.broadcast %cst_11 : f32 to vector<8x64xf32>
    %16 = arith.maximumf %14, %15 : vector<8x64xf32>
    %c0_12 = arith.constant 0 : index
    %c0_13 = arith.constant 0 : index
    %17 = vector.load %arg6[%c0_12, %c0_13] : memref<64x10xbf16, #tpu.memory_space<vmem>>, vector<64x10xbf16>
    %18 = arith.extf %17 : vector<64x10xbf16> to vector<64x10xf32>
    %cst_14 = arith.constant dense<0.000000e+00> : vector<8x10xf32>
    %19 = tpu.matmul %16, %18, %cst_14 {dimension_numbers = #tpu.dot_dimension_numbers<[1], [0], [0], [1], [0, 0, 1, 1], [], []>} : vector<8x64xf32>, vector<64x10xf32>, vector<8x10xf32> -> vector<8x10xf32>
    %c0_15 = arith.constant 0 : index
    %c0_16 = arith.constant 0 : index
    %20 = vector.load %arg7[%c0_15, %c0_16] : memref<1x10xf32, #tpu.memory_space<vmem>>, vector<1x10xf32>
    %21 = vector.broadcast %20 : vector<1x10xf32> to vector<8x10xf32>
    %22 = arith.addf %19, %21 : vector<8x10xf32>
    %cst_17 = arith.constant dense<0xFF800000> : vector<8xf32>
    %23 = vector.multi_reduction <maximumf>, %22, %cst_17 [1] : vector<8x10xf32> to vector<8xf32>
    %24 = vector.shape_cast %23 : vector<8xf32> to vector<8x1xf32>
    %25 = vector.broadcast %24 : vector<8x1xf32> to vector<8x10xf32>
    %26 = arith.subf %22, %25 : vector<8x10xf32>
    %27 = math.exp %26 : vector<8x10xf32>
    %cst_18 = arith.constant dense<0.000000e+00> : vector<8xf32>
    %28 = vector.multi_reduction <add>, %27, %cst_18 [1] : vector<8x10xf32> to vector<8xf32>
    %29 = vector.shape_cast %28 : vector<8xf32> to vector<8x1xf32>
    %30 = math.log %29 : vector<8x1xf32>
    %31 = vector.broadcast %30 : vector<8x1xf32> to vector<8x10xf32>
    %32 = arith.subf %26, %31 : vector<8x10xf32>
    %c0_19 = arith.constant 0 : index
    %c0_20 = arith.constant 0 : index
    %33 = vector.load %arg8[%c0_19, %c0_20] : memref<8x10xf32, #tpu.memory_space<vmem>>, vector<8x10xf32>
    tpu.vector_store %arg8[%c0_19, %c0_20], %32 {strides = array<i32>} : memref<8x10xf32, #tpu.memory_space<vmem>>, vector<8x10xf32>,
    return
  }
  func.func @transform_0(%arg0: i32) -> (i32, i32) {
    %c0_i32 = arith.constant 0 : i32
    %c0_i32_0 = arith.constant 0 : i32
    return %arg0, %c0_i32 : i32, i32
  }
  func.func @transform_1(%arg0: i32) -> (i32, i32) {
    %c0_i32 = arith.constant 0 : i32
    %c0_i32_0 = arith.constant 0 : i32
    %c0_i32_1 = arith.constant 0 : i32
    return %c0_i32, %c0_i32_0 : i32, i32
  }
  func.func @transform_2(%arg0: i32) -> (i32, i32) {
    %c0_i32 = arith.constant 0 : i32
    %c0_i32_0 = arith.constant 0 : i32
    %c0_i32_1 = arith.constant 0 : i32
    return %c0_i32, %c0_i32_0 : i32, i32
  }
  func.func @transform_3(%arg0: i32) -> (i32, i32) {
    %c0_i32 = arith.constant 0 : i32
    %c0_i32_0 = arith.constant 0 : i32
    %c0_i32_1 = arith.constant 0 : i32
    return %c0_i32, %c0_i32_0 : i32, i32
  }
  func.func @transform_4(%arg0: i32) -> (i32, i32) {
    %c0_i32 = arith.constant 0 : i32
    %c0_i32_0 = arith.constant 0 : i32
    %c0_i32_1 = arith.constant 0 : i32
    return %c0_i32, %c0_i32_0 : i32, i32
  }
  func.func @transform_5(%arg0: i32) -> (i32, i32) {
    %c0_i32 = arith.constant 0 : i32
    %c0_i32_0 = arith.constant 0 : i32
    %c0_i32_1 = arith.constant 0 : i32
    return %c0_i32, %c0_i32_0 : i32, i32
  }
  func.func @transform_6(%arg0: i32) -> (i32, i32) {
    %c0_i32 = arith.constant 0 : i32
    %c0_i32_0 = arith.constant 0 : i32
    %c0_i32_1 = arith.constant 0 : i32
    return %c0_i32, %c0_i32_0 : i32, i32
  }
  func.func @transform_7(%arg0: i32) -> (i32, i32) {
    %c0_i32 = arith.constant 0 : i32
    %c0_i32_0 = arith.constant 0 : i32
    return %arg0, %c0_i32 : i32, i32
  }
}

</mosaic_0001>

<bundles_post_ra>
// kernel: tpu_custom_call.1
= control target key start
LH: loop header
LB: loop body
LE: loop exit
PB: predicated region body
PF: predicated region fallthrough
CT: control target
= control target key end

     0   :  { %12 = vsyncpa [#allocation3], 0  ;;  %s1592_s0 = inlined_call_operand.vmem [shape: f32[8,896], index: 0, kind: input, shape index: {}]   ;;  %s1593_s1 = inlined_call_operand.hbm [shape: bf16[896,128], index: 1, kind: input, shape index: {}]   ;;  %s1594_s2 = inlined_call_operand.vmem [shape: f32[1,128], index: 2, kind: input, shape index: {}]   ;;  %s1595_s3 = inlined_call_operand.vmem [shape: bf16[128,64], index: 3, kind: input, shape index: {}]   ;;  %s1596_s4 = inlined_call_operand.vmem [shape: f32[1,64], index: 4, kind: input, shape index: {}]   ;;  %s1597_s5 = inlined_call_operand.vmem [shape: bf16[64,10], index: 5, kind: input, shape index: {}]   ;;  %s1598_s6 = inlined_call_operand.vmem [shape: f32[1,10], index: 6, kind: input, shape index: {}]   ;;  %s1599_s7 = inlined_call_operand.hbm [shape: f32[8,10], index: 7, kind: output, shape index: {}]  }
   0x1   :  { %13 = vsyncpa [#allocation4], 0  ;;  %s1428_s24 = smov [#allocation2]  }
   0x2   :  { %s21_s25 = sshll.u32 %s1428_s24, 4  ;;  %s22_s25 = int_to_ptr.vmem [resolvable:$true] %s21_s25 }
   0x3   :  { %s1392_s26 = scalar_lea.vmem %s22_s25, 7168  ;;  %p1397_p1 = scmp.lt.s32.totalorder %s22_s25, %s22_s25 }
   0x4   :  { %p1393_p0 = scmp.ne.s32.totalorder %s22_s25, %s1392_s26  ;;  %p1398_p2 = scmp.lt.s32.totalorder %s1392_s26, %s1392_s26 }
   0x6   :  { %p1399_p3 = por %p1398_p2, %p1397_p1 }
   0x8   :  { %p1400_p4 = pnand %p1399_p3, %p1393_p0 }
   0xa   :  { %1403 = shalt.err (!%p1400_p4)
}
   0xb   :  { %s1429_s27 = smov 64   ;;  %s1430_s28 = smov 4  }
   0xc   :  { %27 = dma.hbm_to_vmem [thread:$0]  %s1593_s1, 7168, %s22_s25, [#allocation3], %s1429_s27, %s1429_s27, %s1430_s28  }
   0xd   :  { %1424 = dma.done.wait [#allocation3], 7168  }
   0xe   :  { %1425 = vsyncadd [#allocation3], 4294960128  ;;  %v1086_v0 = vld [vmem:[#allocation2 + $0x78] sm:$0xff]   ;;  %v1085_v7 = vld [vmem:[#allocation2 + $0x70] sm:$0xff]   ;;  %vm1432_vm0 = vmmov 0   ;;  %vm693_vm1 = vcmask 523264  }
   0xf   :  { %v1078_v1 = vld [vmem:[#allocation2 + $0x38] sm:$0xff]   ;;  %v862_v3 = vunpack.c.l.bf16 %v1086_v0  ;;  %v863_v4 = vunpack.c.h.bf16 %v1086_v0  ;;  %v1077_v8 = vld [vmem:[#allocation2 + $0x30] sm:$0xff]   ;;  %v859_v16 = vunpack.c.h.bf16 %v1085_v7  ;;  %v1084_v19 = vld [vmem:[#allocation2 + $0x68] sm:$0xff]   ;;  %v858_v20 = vunpack.c.l.bf16 %v1085_v7 }
  0x10   :  { %v1102_v2 = vld [vmem:[#allocation2 + $0xf8] sm:$0xff]   ;;  %v831_v5 = vunpack.c.h.bf16 %v1078_v1  ;;  %v830_v9 = vunpack.c.l.bf16 %v1078_v1  ;;  %v1101_v13 = vld [vmem:[#allocation2 + $0xf0] sm:$0xff]   ;;  %v827_v17 = vunpack.c.h.bf16 %v1077_v8  ;;  %v1076_v22 = vld [vmem:[#allocation2 + $0x28] sm:$0xff]   ;;  %v826_v24 = vunpack.c.l.bf16 %v1077_v8 }
  0x11   :  { %v1094_v6 = vld [vmem:[#allocation2 + $0xb8] sm:$0xff]   ;;  %v926_v10 = vunpack.c.l.bf16 %v1102_v2  ;;  %v927_v11 = vunpack.c.h.bf16 %v1102_v2  ;;  %v1093_v14 = vld [vmem:[#allocation2 + $0xb0] sm:$0xff]   ;;  %1137 = vmatprep.subr.mxu0 %v863_v4  ;;  %v923_v18 = vunpack.c.h.bf16 %v1101_v13  ;;  %v1100_v23 = vld [vmem:[#allocation2 + $0xe8] sm:$0xff]   ;;  %v922_v25 = vunpack.c.l.bf16 %v1101_v13 }
  0x12   :  { %v895_v12 = vunpack.c.h.bf16 %v1094_v6  ;;  %v894_v15 = vunpack.c.l.bf16 %v1094_v6  ;;  %1138 = vmatpush3.msra.mxu0 %v831_v5  ;;  %v891_v21 = vunpack.c.h.bf16 %v1093_v14  ;;  %v1092_v26 = vld [vmem:[#allocation2 + $0xa8] sm:$0xff]   ;;  %v855_v27 = vunpack.c.h.bf16 %v1084_v19  ;;  %v1083_v31 = vld [vmem:[#allocation2 + $0x60] sm:$0xff]   ;;  %v1082_v43 = vld [vmem:[#allocation2 + $0x58] sm:$0xff]  }
  0x13   :  { %1172 = vmatprep.subr.mxu1 %v927_v11  ;;  %1139 = vmatprep.subr.mxu0 %v862_v3  ;;  %v890_v28 = vunpack.c.l.bf16 %v1093_v14  ;;  %v823_v29 = vunpack.c.h.bf16 %v1076_v22  ;;  %v919_v30 = vunpack.c.h.bf16 %v1100_v23  ;;  %v854_v32 = vunpack.c.l.bf16 %v1084_v19  ;;  %v1075_v34 = vld [vmem:[#allocation2 + $0x20] sm:$0xff]   ;;  %v1074_v46 = vld [vmem:[#allocation2 + $0x18] sm:$0xff]   ;;  %v1081_v55 = vld [vmem:[#allocation2 + $0x50] sm:$0xff]  }
  0x14   :  { %1173 = vmatpush3.msra.mxu1 %v895_v12  ;;  %1140 = vmatpush3.msra.mxu0 %v830_v9  ;;  %v887_v33 = vunpack.c.h.bf16 %v1092_v26  ;;  %v1099_v35 = vld [vmem:[#allocation2 + $0xe0] sm:$0xff]   ;;  %v822_v36 = vunpack.c.l.bf16 %v1076_v22  ;;  %v918_v37 = vunpack.c.l.bf16 %v1100_v23  ;;  %v851_v39 = vunpack.c.h.bf16 %v1083_v31  ;;  %v1098_v47 = vld [vmem:[#allocation2 + $0xd8] sm:$0xff]   ;;  %v1073_v58 = vld [vmem:[#allocation2 + $0x10] sm:$0xff]  }
  0x15   :  { %1174 = vmatprep.subr.mxu1 %v926_v10  ;;  %1141 = vmatprep.subr.mxu0 %v859_v16  ;;  %v1091_v38 = vld [vmem:[#allocation2 + $0xa0] sm:$0xff]   ;;  %v886_v40 = vunpack.c.l.bf16 %v1092_v26  ;;  %v819_v41 = vunpack.c.h.bf16 %v1075_v34  ;;  %v915_v42 = vunpack.c.h.bf16 %v1099_v35  ;;  %v850_v44 = vunpack.c.l.bf16 %v1083_v31  ;;  %v1090_v50 = vld [vmem:[#allocation2 + $0x98] sm:$0xff]   ;;  %v1097_v59 = vld [vmem:[#allocation2 + $0xd0] sm:$0xff]  }
  0x16   :  { %1175 = vmatpush3.msra.mxu1 %v894_v15  ;;  %1142 = vmatpush3.msra.mxu0 %v827_v17  ;;  %v883_v45 = vunpack.c.h.bf16 %v1091_v38  ;;  %v818_v48 = vunpack.c.l.bf16 %v1075_v34  ;;  %v914_v49 = vunpack.c.l.bf16 %v1099_v35  ;;  %v847_v51 = vunpack.c.h.bf16 %v1082_v43  ;;  %v1089_v62 = vld [vmem:[#allocation2 + $0x90] sm:$0xff]   ;;  %v1080_v3 = vld [vmem:[#allocation2 + $0x48] sm:$0xff]   ;;  %v1079_v15 = vld [vmem:[#allocation2 + $0x40] sm:$0xff]  }
  0x17   :  { %1176 = vmatprep.subr.mxu1 %v923_v18  ;;  %1143 = vmatprep.subr.mxu0 %v858_v20  ;;  %v882_v52 = vunpack.c.l.bf16 %v1091_v38  ;;  %v815_v53 = vunpack.c.h.bf16 %v1074_v46  ;;  %v911_v54 = vunpack.c.h.bf16 %v1098_v47  ;;  %v846_v56 = vunpack.c.l.bf16 %v1082_v43  ;;  %v1072_v6 = vld [vmem:[#allocation2 + $0x8] sm:$0xff]   ;;  %v801_v18 = vld [vmem:[#allocation2] sm:$0xff]   ;;  %v1117_v38 = vld [vmem:[#allocation2 + $0x170] sm:$0xff]  }
  0x18   :  { %1177 = vmatpush3.msra.mxu1 %v891_v21  ;;  %1144 = vmatpush3.msra.mxu0 %v826_v24  ;;  %v879_v57 = vunpack.c.h.bf16 %v1090_v50  ;;  %v814_v60 = vunpack.c.l.bf16 %v1074_v46  ;;  %v910_v61 = vunpack.c.l.bf16 %v1098_v47  ;;  %v843_v63 = vunpack.c.h.bf16 %v1081_v55  ;;  %v1096_v7 = vld [vmem:[#allocation2 + $0xc8] sm:$0xff]   ;;  %v1095_v19 = vld [vmem:[#allocation2 + $0xc0] sm:$0xff]   ;;  %v43_v43 = vld [vmem:[%s1592_s0 + $0x10] sm:$0xff] }
  0x19   :  { %1178 = vmatprep.subr.mxu1 %v922_v25  ;;  %1145 = vmatprep.subr.mxu0 %v855_v27  ;;  %v878_v0 = vunpack.c.l.bf16 %v1090_v50  ;;  %v811_v1 = vunpack.c.h.bf16 %v1073_v58  ;;  %v907_v2 = vunpack.c.h.bf16 %v1097_v59  ;;  %v842_v4 = vunpack.c.l.bf16 %v1081_v55  ;;  %v1088_v10 = vld [vmem:[#allocation2 + $0x88] sm:$0xff]   ;;  %v1087_v24 = vld [vmem:[#allocation2 + $0x80] sm:$0xff]  }
  0x1a   :  { %1179 = vmatpush3.msra.mxu1 %v890_v28  ;;  %1146 = vmatpush3.msra.mxu0 %v823_v29  ;;  %v875_v5 = vunpack.c.h.bf16 %v1089_v62  ;;  %v810_v8 = vunpack.c.l.bf16 %v1073_v58  ;;  %v906_v9 = vunpack.c.l.bf16 %v1097_v59  ;;  %v839_v11 = vunpack.c.h.bf16 %v1080_v3  ;;  %v1118_v28 = vld [vmem:[#allocation2 + $0x178] sm:$0xff]   ;;  %v41_v34 = vld [vmem:[%s1592_s0] sm:$0xff]  ;;  %v1124_v59 = vld [vmem:[#allocation2 + $0x1a8] sm:$0xff]  }
  0x1b   :  { %1180 = vmatprep.subr.mxu1 %v919_v30  ;;  %1147 = vmatprep.subr.mxu0 %v854_v32  ;;  %v874_v12 = vunpack.c.l.bf16 %v1089_v62  ;;  %v807_v13 = vunpack.c.h.bf16 %v1072_v6  ;;  %v903_v14 = vunpack.c.h.bf16 %v1096_v7  ;;  %v838_v16 = vunpack.c.l.bf16 %v1080_v3  ;;  %v42_v30 = vld [vmem:[%s1592_s0 + $0x8] sm:$0xff]  ;;  %v1110_v32 = vld [vmem:[#allocation2 + $0x138] sm:$0xff]   ;;  %v1115_v58 = vld [vmem:[#allocation2 + $0x160] sm:$0xff]  }
  0x1c   :  { %1181 = vmatpush3.msra.mxu1 %v887_v33  ;;  %1148 = vmatpush3.msra.mxu0 %v822_v36  ;;  %v871_v17 = vunpack.c.h.bf16 %v1088_v10  ;;  %v806_v20 = vunpack.c.l.bf16 %v1072_v6  ;;  %v902_v21 = vunpack.c.l.bf16 %v1096_v7  ;;  %v835_v22 = vunpack.c.h.bf16 %v1079_v15  ;;  %v1107_v62 = vld [vmem:[#allocation2 + $0x120] sm:$0xff]   ;;  %v1114_v3 = vld [vmem:[#allocation2 + $0x158] sm:$0xff]  }
  0x1d   :  { %1182 = vmatprep.subr.mxu1 %v918_v37  ;;  %1149 = vmatprep.subr.mxu0 %v851_v39  ;;  %v870_v23 = vunpack.c.l.bf16 %v1088_v10  ;;  %v803_v25 = vunpack.c.h.bf16 %v801_v18  ;;  %v899_v26 = vunpack.c.h.bf16 %v1095_v19  ;;  %v834_v27 = vunpack.c.l.bf16 %v1079_v15  ;;  %v1126_v39 = vld [vmem:[#allocation2 + $0x1b8] sm:$0xff]  }
  0x1e   :  { %1183 = vmatpush3.msra.mxu1 %v886_v40  ;;  %1150 = vmatpush3.msra.mxu0 %v819_v41  ;;  %v802_v29 = vunpack.c.l.bf16 %v801_v18  ;;  %v867_v31 = vunpack.c.h.bf16 %v1087_v24  ;;  %v898_v33 = vunpack.c.l.bf16 %v1095_v19  ;;  %v991_v35 = vunpack.c.h.bf16 %v1118_v28  ;;  %v44_v40 = vld [vmem:[%s1592_s0 + $0x18] sm:$0xff] }
  0x1f   :  { %1184 = vmatprep.subr.mxu1 %v915_v42  ;;  %1151 = vmatprep.subr.mxu0 %v850_v44  ;;  %v866_v36 = vunpack.c.l.bf16 %v1087_v24  ;;  %v959_v37 = vunpack.c.h.bf16 %v1110_v32  ;;  %v990_v41 = vunpack.c.l.bf16 %v1118_v28  ;;  %v1109_v42 = vld [vmem:[#allocation2 + $0x130] sm:$0xff]   ;;  %v958_v44 = vunpack.c.l.bf16 %v1110_v32  ;;  %v1106_v7 = vld [vmem:[#allocation2 + $0x118] sm:$0xff]  }
  0x20   :  { %1185 = vmatpush3.msra.mxu1 %v883_v45  ;;  %1152 = vmatpush3.msra.mxu0 %v818_v48  ;;  %v987_v45 = vunpack.c.h.bf16 %v1117_v38  ;;  %v1023_v46 = vunpack.c.h.bf16 %v1126_v39  ;;  %v955_v47 = vunpack.c.h.bf16 %v1109_v42  ;;  %v1116_v48 = vld [vmem:[#allocation2 + $0x168] sm:$0xff]   ;;  %v986_v50 = vunpack.c.l.bf16 %v1117_v38 }
  0x21   :  { %1186 = vmatprep.subr.mxu1 %v914_v49  ;;  %1153 = vmatprep.subr.mxu0 %v847_v51  ;;  %v1125_v49 = vld [vmem:[#allocation2 + $0x1b0] sm:$0xff]   ;;  %v1022_v51 = vunpack.c.l.bf16 %v1126_v39  ;;  %v983_v55 = vunpack.c.h.bf16 %v1116_v48  ;;  %v1014_v6 = vunpack.c.l.bf16 %v1124_v59  ;;  %vm767_vm2 = vcmask 80896  }
  0x22   :  { %1187 = vmatpush3.msra.mxu1 %v882_v52  ;;  %1154 = vmatpush3.msra.mxu0 %v815_v53  ;;  %v1108_v52 = vld [vmem:[#allocation2 + $0x128] sm:$0xff]   ;;  %v1431_v53 = vmov 0.0  }
  0x23   :  { %1188 = vmatprep.subr.mxu1 %v911_v54  ;;  %1155 = vmatprep.subr.mxu0 %v846_v56  ;;  %v954_v54 = vunpack.c.l.bf16 %v1109_v42  ;;  %v1019_v56 = vunpack.c.h.bf16 %v1125_v49  ;;  %v46_v42 = vld [vmem:[%s1592_s0 + $0x28] sm:$0xff] }
  0x24   :  { %1189 = vmatpush3.msra.mxu1 %v879_v57  ;;  %1156 = vmatpush3.msra.mxu0 %v814_v60  ;;  %v951_v57 = vunpack.c.h.bf16 %v1108_v52  ;;  %v982_v60 = vunpack.c.l.bf16 %v1116_v48  ;;  %v1133_v48 = vld [vmem:[%s1595_s3 + $0x38] sm:$0xff]  }
  0x25   :  { %1190 = vmatprep.subr.mxu1 %v910_v61  ;;  %1157 = vmatprep.subr.mxu0 %v843_v63  ;;  %v1018_v61 = vunpack.c.l.bf16 %v1125_v49  ;;  %v950_v63 = vunpack.c.l.bf16 %v1108_v52  ;;  %v1132_v49 = vld [vmem:[%s1595_s3 + $0x30] sm:$0xff]  }
  0x26   :  { %1191 = vmatpush3.msra.mxu1 %v878_v0  ;;  %1158 = vmatpush3.msra.mxu0 %v811_v1  ;;  %v979_v0 = vunpack.c.h.bf16 %v1115_v58  ;;  %v1015_v1 = vunpack.c.h.bf16 %v1124_v59  ;;  %v1051_v52 = vunpack.c.h.bf16 %v1132_v49 }
  0x27   :  { %1192 = vmatprep.subr.mxu1 %v907_v2  ;;  %1159 = vmatprep.subr.mxu0 %v842_v4  ;;  %v947_v2 = vunpack.c.h.bf16 %v1107_v62  ;;  %v1123_v4 = vld [vmem:[#allocation2 + $0x1a0] sm:$0xff]  }
  0x28   :  { %1193 = vmatpush3.msra.mxu1 %v875_v5  ;;  %1160 = vmatpush3.msra.mxu0 %v810_v8  ;;  %v978_v5 = vunpack.c.l.bf16 %v1115_v58  ;;  %v946_v8 = vunpack.c.l.bf16 %v1107_v62  ;;  %v1011_v10 = vunpack.c.h.bf16 %v1123_v4  ;;  %v1010_v15 = vunpack.c.l.bf16 %v1123_v4 }
  0x29   :  { %1194 = vmatprep.subr.mxu1 %v906_v9  ;;  %1161 = vmatprep.subr.mxu0 %v839_v11  ;;  %v975_v9 = vunpack.c.h.bf16 %v1114_v3  ;;  %v943_v11 = vunpack.c.h.bf16 %v1106_v7 }
  0x2a   :  { %1195 = vmatpush3.msra.mxu1 %v874_v12  ;;  %1162 = vmatpush3.msra.mxu0 %v807_v13  ;;  %v1113_v12 = vld [vmem:[#allocation2 + $0x150] sm:$0xff]   ;;  %v1122_v13 = vld [vmem:[#allocation2 + $0x198] sm:$0xff]  }
  0x2b   :  { %1196 = vmatprep.subr.mxu1 %v903_v14  ;;  %1163 = vmatprep.subr.mxu0 %v838_v16  ;;  %v974_v14 = vunpack.c.l.bf16 %v1114_v3  ;;  %v1105_v16 = vld [vmem:[#allocation2 + $0x110] sm:$0xff]   ;;  %v971_v18 = vunpack.c.h.bf16 %v1113_v12  ;;  %v1007_v19 = vunpack.c.h.bf16 %v1122_v13  ;;  %v1006_v24 = vunpack.c.l.bf16 %v1122_v13  ;;  %v1127_v3 = vld [vmem:[%s1595_s3 + $0x8] sm:$0xff]  }
  0x2c   :  { %1197 = vmatpush3.msra.mxu1 %v871_v17  ;;  %1164 = vmatpush3.msra.mxu0 %v806_v20  ;;  %v942_v17 = vunpack.c.l.bf16 %v1106_v7  ;;  %v939_v20 = vunpack.c.h.bf16 %v1105_v16  ;;  %v1031_v4 = vunpack.c.h.bf16 %v1127_v3 }
  0x2d   :  { %1198 = vmatprep.subr.mxu1 %v902_v21  ;;  %1165 = vmatprep.subr.mxu0 %v835_v22  ;;  %v1112_v21 = vld [vmem:[#allocation2 + $0x148] sm:$0xff]   ;;  %v1121_v22 = vld [vmem:[#allocation2 + $0x190] sm:$0xff]  }
  0x2e   :  { %1199 = vmatpush3.msra.mxu1 %v870_v23  ;;  %1166 = vmatpush3.msra.mxu0 %v803_v25  ;;  %v970_v23 = vunpack.c.l.bf16 %v1113_v12  ;;  %v1104_v25 = vld [vmem:[#allocation2 + $0x108] sm:$0xff]   ;;  %v1003_v28 = vunpack.c.h.bf16 %v1121_v22  ;;  %v966_v32 = vunpack.c.l.bf16 %v1112_v21 }
  0x2f   :  { %1200 = vmatprep.subr.mxu1 %v899_v26  ;;  %1167 = vmatprep.subr.mxu0 %v834_v27  ;;  %v938_v26 = vunpack.c.l.bf16 %v1105_v16  ;;  %v967_v27 = vunpack.c.h.bf16 %v1112_v21  ;;  %v796_v21 = vld [vmem:[%s1594_s2] ss:$0 sm:$0xff] }
  0x30   :  { %343 = vmatprep.mubr.f32.mxu0 %v42_v30  ;;  %1168 = vmatpush3.msra.mxu0 %v802_v29  ;;  %v935_v29 = vunpack.c.h.bf16 %v1104_v25  ;;  %v1111_v30 = vld [vmem:[#allocation2 + $0x140] sm:$0xff]  }
  0x31   :  { %1201 = vmatpush3.msra.mxu1 %v867_v31  ;;  %344 = vmatmul.mubr.f32.vlgmr.msra.gmra.mxu0 %v41_v34  ;;  %v1120_v31 = vld [vmem:[#allocation2 + $0x188] sm:$0xff]   ;;  %v1103_v34 = vld [vmem:[#allocation2 + $0x100] sm:$0xff]   ;;  %v962_v39 = vunpack.c.l.bf16 %v1111_v30 }
  0x32   :  { %1202 = vmatprep.subr.mxu1 %v898_v33  ;;  %1207 = vmatprep.subr.mxu0 %v991_v35  ;;  %v1002_v33 = vunpack.c.l.bf16 %v1121_v22  ;;  %v934_v35 = vunpack.c.l.bf16 %v1104_v25  ;;  %v931_v38 = vunpack.c.h.bf16 %v1103_v34 }
  0x33   :  { %1203 = vmatpush3.msra.mxu1 %v866_v36  ;;  %413 = vmatprep.mubr.f32.mxu1 %v44_v40  ;;  %v963_v36 = vunpack.c.h.bf16 %v1111_v30  ;;  %v1119_v40 = vld [vmem:[#allocation2 + $0x180] sm:$0xff]  }
  0x34   :  { %1208 = vmatpush3.msra.mxu0 %v959_v37  ;;  %414 = vmatmul.mubr.f32.vlgmr.msra.gmra.mxu1 %v43_v43  ;;  %v999_v37 = vunpack.c.h.bf16 %v1120_v31  ;;  %v998_v43 = vunpack.c.l.bf16 %v1120_v31 }
  0x35   :  { %1209 = vmatprep.subr.mxu0 %v990_v41  ;;  %1285 = vmatprep.subr.mxu1 %v1431_v53  ;;  %v930_v41 = vunpack.c.l.bf16 %v1103_v34 }
  0x36   :  { %1210 = vmatpush3.msra.mxu0 %v958_v44  ;;  %1286 = vmatpush3.msra.mxu1 %v1023_v46  ;;  %v45_v44 = vld [vmem:[%s1592_s0 + $0x20] sm:$0xff]  ;;  %v994_v46 = vunpack.c.l.bf16 %v1119_v40 }
  0x37   :  { %1211 = vmatprep.subr.mxu0 %v987_v45  ;;  %1287 = vmatprep.subr.mxu1 %v1431_v53  ;;  %v995_v45 = vunpack.c.h.bf16 %v1119_v40 }
  0x38   :  { %1212 = vmatpush3.msra.mxu0 %v955_v47  ;;  %1288 = vmatpush3.msra.mxu1 %v1022_v51  ;;  %v47_v47 = vld [vmem:[%s1592_s0 + $0x30] sm:$0xff]  ;;  %v1054_v51 = vunpack.c.l.bf16 %v1133_v48 }
  0x39   :  { %1213 = vmatprep.subr.mxu0 %v986_v50  ;;  %1289 = vmatprep.subr.mxu1 %v1431_v53  ;;  %v1055_v50 = vunpack.c.h.bf16 %v1133_v48 }
  0x3a   :  { %1214 = vmatpush3.msra.mxu0 %v954_v54  ;;  %1290 = vmatpush3.msra.mxu1 %v1019_v56  ;;  %v1131_v54 = vld [vmem:[%s1595_s3 + $0x28] sm:$0xff]  }
  0x3b   :  { %1215 = vmatprep.subr.mxu0 %v983_v55  ;;  %1291 = vmatprep.subr.mxu1 %v1431_v53  ;;  %v1050_v55 = vunpack.c.l.bf16 %v1132_v49  ;;  %v1047_v56 = vunpack.c.h.bf16 %v1131_v54  ;;  %v1046_v58 = vunpack.c.l.bf16 %v1131_v54 }
  0x3c   :  { %1216 = vmatpush3.msra.mxu0 %v951_v57  ;;  %1292 = vmatpush3.msra.mxu1 %v1018_v61  ;;  %v1130_v57 = vld [vmem:[%s1595_s3 + $0x20] sm:$0xff]  }
  0x3d   :  { %1217 = vmatprep.subr.mxu0 %v982_v60  ;;  %1293 = vmatprep.subr.mxu1 %v1431_v53  ;;  %v1043_v59 = vunpack.c.h.bf16 %v1130_v57  ;;  %v1129_v60 = vld [vmem:[%s1595_s3 + $0x18] sm:$0xff]   ;;  %v1042_v61 = vunpack.c.l.bf16 %v1130_v57 }
  0x3e   :  { %1218 = vmatpush3.msra.mxu0 %v950_v63  ;;  %1294 = vmatpush3.msra.mxu1 %v1015_v1  ;;  %v1039_v62 = vunpack.c.h.bf16 %v1129_v60  ;;  %v1038_v63 = vunpack.c.l.bf16 %v1129_v60 }
  0x3f   :  { %1219 = vmatprep.subr.mxu0 %v979_v0  ;;  %1295 = vmatprep.subr.mxu1 %v1431_v53  ;;  %v1128_v0 = vld [vmem:[%s1595_s3 + $0x10] sm:$0xff]  }
  0x40   :  { %1220 = vmatpush3.msra.mxu0 %v947_v2  ;;  %1296 = vmatpush3.msra.mxu1 %v1014_v6  ;;  %v1035_v1 = vunpack.c.h.bf16 %v1128_v0  ;;  %v1034_v2 = vunpack.c.l.bf16 %v1128_v0  ;;  %v1025_v6 = vld [vmem:[%s1595_s3] sm:$0xff]  }
  0x41   :  { %1221 = vmatprep.subr.mxu0 %v978_v5  ;;  %1297 = vmatprep.subr.mxu1 %v1431_v53  ;;  %v1030_v5 = vunpack.c.l.bf16 %v1127_v3  ;;  %v1027_v7 = vunpack.c.h.bf16 %v1025_v6 }
  0x42   :  { %1222 = vmatpush3.msra.mxu0 %v946_v8  ;;  %1298 = vmatpush3.msra.mxu1 %v1011_v10  ;;  %v1026_v8 = vunpack.c.l.bf16 %v1025_v6  ;;  %v1135_v10 = vld [vmem:[%s1597_s5 + $0x10] sm:$0xff]  }
  0x43   :  { %1223 = vmatprep.subr.mxu0 %v975_v9  ;;  %1299 = vmatprep.subr.mxu1 %v1431_v53  ;;  %v1136_v9 = vld [vmem:[%s1597_s5 + $0x18] sm:$0xff]   ;;  %v1067_v13 = vunpack.c.h.bf16 %v1135_v10 }
  0x44   :  { %1224 = vmatpush3.msra.mxu0 %v943_v11  ;;  %1300 = vmatpush3.msra.mxu1 %v1010_v15  ;;  %v1071_v11 = vunpack.c.h.bf16 %v1136_v9  ;;  %v1070_v12 = vunpack.c.l.bf16 %v1136_v9  ;;  %v1066_v15 = vunpack.c.l.bf16 %v1135_v10 }
  0x45   :  { %1225 = vmatprep.subr.mxu0 %v974_v14  ;;  %1301 = vmatprep.subr.mxu1 %v1431_v53  ;;  %v1134_v14 = vld [vmem:[%s1597_s5 + $0x8] sm:$0xff]  }
  0x46   :  { %1226 = vmatpush3.msra.mxu0 %v942_v17  ;;  %1302 = vmatpush3.msra.mxu1 %v1007_v19  ;;  %v1063_v16 = vunpack.c.h.bf16 %v1134_v14  ;;  %v1062_v34 = vunpack.c.l.bf16 %v1134_v14 }
  0x47   :  { %1227 = vmatprep.subr.mxu0 %v971_v18  ;;  %1303 = vmatprep.subr.mxu1 %v1431_v53 }
  0x48   :  { %1228 = vmatpush3.msra.mxu0 %v939_v20  ;;  %1304 = vmatpush3.msra.mxu1 %v1006_v24 }
  0x49   :  { %1229 = vmatprep.subr.mxu0 %v970_v23  ;;  %1305 = vmatprep.subr.mxu1 %v1431_v53 }
  0x4a   :  { %1230 = vmatpush3.msra.mxu0 %v938_v26  ;;  %1306 = vmatpush3.msra.mxu1 %v1003_v28 }
  0x4b   :  { %1231 = vmatprep.subr.mxu0 %v967_v27  ;;  %1307 = vmatprep.subr.mxu1 %v1431_v53 }
  0x4c   :  { %1232 = vmatpush3.msra.mxu0 %v935_v29  ;;  %1308 = vmatpush3.msra.mxu1 %v1002_v33 }
  0x4d   :  { %1233 = vmatprep.subr.mxu0 %v966_v32  ;;  %1309 = vmatprep.subr.mxu1 %v1431_v53 }
  0x4e   :  { %1234 = vmatpush3.msra.mxu0 %v934_v35  ;;  %1310 = vmatpush3.msra.mxu1 %v999_v37  ;;  %v1057_v35 = vld [vmem:[%s1597_s5] sm:$0xff]  }
  0x4f   :  { %1235 = vmatprep.subr.mxu0 %v963_v36  ;;  %1311 = vmatprep.subr.mxu1 %v1431_v53  ;;  %v1059_v36 = vunpack.c.h.bf16 %v1057_v35  ;;  %v1058_v37 = vunpack.c.l.bf16 %v1057_v35 }
  0x50   :  { %1236 = vmatpush3.msra.mxu0 %v931_v38  ;;  %483 = vmatprep.mubr.f32.mxu0 %v46_v42  ;;  %v797_v38 = vld [vmem:[%s1596_s4] ss:$0 sm:$0xff]  ;;  %s1433_s4 = smov [#allocation5]  }
  0x51   :  { %1237 = vmatprep.subr.mxu0 %v962_v39  ;;  %1312 = vmatpush3.msra.mxu1 %v998_v43  ;;  %v798_v43 = vld [vmem:[%s1598_s6] ss:$0 sm:$0xff]  ;;  %s787_s6 = sshll.u32 %s1433_s4, 4  ;;  %s788_s6 = int_to_ptr.vmem [resolvable:$true] %s787_s6 }
  0x52   :  { %1238 = vmatpush3.msra.mxu0 %v930_v41  ;;  %1313 = vmatprep.subr.mxu1 %v1431_v53  ;;  %s1404_s23 = scalar_lea.vmem %s788_s6, 128  ;;  %p1409_p6 = scmp.lt.s32.totalorder %s788_s6, %s788_s6 }
  0x53   :  { %484 = vmatmul.mubr.f32.vlgmr.msra.gmra.mxu0 %v45_v44  ;;  %1314 = vmatpush3.msra.mxu1 %v995_v45  ;;  %p1405_p5 = scmp.ne.s32.totalorder %s788_s6, %s1404_s23  ;;  %p1410_p7 = scmp.lt.s32.totalorder %s1404_s23, %s1404_s23 }
  0x54   :  { %1317 = vmatprep.mubr.msk.f32.mxu1 %vm1432_vm0, %v1431_v53  ;;  %1315 = vmatprep.subr.mxu1 %v1431_v53 }
  0x55   :  { %1320 = vmatprep.subr.mxu0 %v1431_v53  ;;  %1316 = vmatpush3.msra.mxu1 %v994_v46  ;;  %p1411_p8 = por %p1410_p7, %p1409_p6 }
  0x56   :  { %1352 = vmatprep.mubr.msk.f32.mxu0 %vm1432_vm0, %v1431_v53  ;;  %1318 = vmatmul.mubr.f32.vlgmr.msra.gmra.mxu1 %v47_v47 }
  0x57   :  { %1355 = vmatprep.subr.mxu1 %v1431_v53  ;;  %1371 = vmatprep.mubr.msk.f32.mxu1 %vm1432_vm0, %v1431_v53  ;;  %p1412_p9 = pnand %p1411_p8, %p1405_p5 }
  0x58   :  { %1321 = vmatpush3.msra.mxu0 %v1055_v50  ;;  %1356 = vmatpush3.msra.mxu1 %v1071_v11 }
  0x59   :  { %1322 = vmatprep.subr.mxu0 %v1431_v53  ;;  %1357 = vmatprep.subr.mxu1 %v1431_v53 }
  0x5a   :  { %1323 = vmatpush3.msra.mxu0 %v1054_v51  ;;  %1358 = vmatpush3.msra.mxu1 %v1070_v12 }
  0x5b   :  { %1324 = vmatprep.subr.mxu0 %v1431_v53  ;;  %1359 = vmatprep.subr.mxu1 %v1431_v53 }
  0x5c   :  { %1325 = vmatpush3.msra.mxu0 %v1051_v52  ;;  %1360 = vmatpush3.msra.mxu1 %v1067_v13 }
  0x5d   :  { %1326 = vmatprep.subr.mxu0 %v1431_v53  ;;  %1361 = vmatprep.subr.mxu1 %v1431_v53 }
  0x5e   :  { %1327 = vmatpush3.msra.mxu0 %v1050_v55  ;;  %1362 = vmatpush3.msra.mxu1 %v1066_v15 }
  0x5f   :  { %1328 = vmatprep.subr.mxu0 %v1431_v53  ;;  %1363 = vmatprep.subr.mxu1 %v1431_v53 }
  0x60   :  { %1329 = vmatpush3.msra.mxu0 %v1047_v56  ;;  %1364 = vmatpush3.msra.mxu1 %v1063_v16 }
  0x61   :  { %1330 = vmatprep.subr.mxu0 %v1431_v53  ;;  %1365 = vmatprep.subr.mxu1 %v1431_v53 }
  0x62   :  { %1331 = vmatpush3.msra.mxu0 %v1046_v58  ;;  %1366 = vmatpush3.msra.mxu1 %v1062_v34 }
  0x63   :  { %1332 = vmatprep.subr.mxu0 %v1431_v53  ;;  %1367 = vmatprep.subr.mxu1 %v1431_v53 }
  0x64   :  { %1333 = vmatpush3.msra.mxu0 %v1043_v59  ;;  %1368 = vmatpush3.msra.mxu1 %v1059_v36 }
  0x65   :  { %1334 = vmatprep.subr.mxu0 %v1431_v53  ;;  %1369 = vmatprep.subr.mxu1 %v1431_v53 }
  0x66   :  { %1335 = vmatpush3.msra.mxu0 %v1042_v61  ;;  %1370 = vmatpush3.msra.mxu1 %v1058_v37 }
  0x67   :  { %1336 = vmatprep.subr.mxu0 %v1431_v53 }
  0x68   :  { %1337 = vmatpush3.msra.mxu0 %v1039_v62 }
  0x69   :  { %1338 = vmatprep.subr.mxu0 %v1431_v53 }
  0x6a   :  { %1339 = vmatpush3.msra.mxu0 %v1038_v63 }
  0x6b   :  { %1340 = vmatprep.subr.mxu0 %v1431_v53 }
  0x6c   :  { %1341 = vmatpush3.msra.mxu0 %v1035_v1 }
  0x6d   :  { %1342 = vmatprep.subr.mxu0 %v1431_v53 }
  0x6e   :  { %1343 = vmatpush3.msra.mxu0 %v1034_v2 }
  0x6f   :  { %1344 = vmatprep.subr.mxu0 %v1431_v53 }
  0x70   :  { %1345 = vmatpush3.msra.mxu0 %v1031_v4 }
  0x71   :  { %1346 = vmatprep.subr.mxu0 %v1431_v53 }
  0x72   :  { %1347 = vmatpush3.msra.mxu0 %v1030_v5 }
  0x73   :  { %1348 = vmatprep.subr.mxu0 %v1431_v53 }
  0x74   :  { %1349 = vmatpush3.msra.mxu0 %v1027_v7 }
  0x75   :  { %1350 = vmatprep.subr.mxu0 %v1431_v53 }
  0x76   :  { %1351 = vmatpush3.msra.mxu0 %v1026_v8 }
  0xf1   :  { %v1169_v17 = vpop.f32.mrf.mxu0 }
  0xf3   :  { %v1170_v18 = vpop.f32.mrf.mxu0 }
  0xf4   :  { %v1204_v19 = vpop.f32.mrf.mxu1  ;;  %v1171_v20 = vadd.f32 %v1170_v18, %v1169_v17 }
  0xf6   :  { %v1205_v22 = vpop.f32.mrf.mxu1  ;;  %v346_v23 = vadd.f32 %v1171_v20, %v796_v21 }
  0xf7   :  { %v1206_v24 = vadd.f32 %v1205_v22, %v1204_v19 }
  0xf9   :  { %v416_v27 = vadd.f32 %v1206_v24, %v346_v23 }
 0x113   :  { %v1239_v25 = vpop.f32.mrf.mxu0 }
 0x115   :  { %v1240_v26 = vpop.f32.mrf.mxu0 }
 0x116   :  { %v1241_v28 = vadd.f32 %v1240_v26, %v1239_v25  ;;  %v555_v29 = vpop.f32.mrf.mxu1 }
 0x118   :  { %v486_v30 = vadd.f32 %v1241_v28, %v416_v27  ;;  %v1319_v31 = vpop.f32.mrf.mxu1 }
 0x11a   :  { %v556_v32 = vadd.f32 %v555_v29, %v486_v30 }
 0x11c   :  { %v559_v33 = vmax.f32 %v556_v32, 0.0 }
 0x11e   :  { %1353 = vmatmul.mubr.f32.vlgmr.msra.gmra.mxu0 %v559_v33 }
 0x1de   :  { %v665_v39 = vpop.f32.mrf.mxu0 }
 0x1df   :  { %v666_v40 = vadd.f32 %v797_v38, %v665_v39 }
 0x1e0   :  { %v1354_v41 = vpop.f32.mrf.mxu0 }
 0x1e1   :  { %v669_v42 = vmax.f32 %v666_v40, 0.0 }
 0x1e3   :  { %1372 = vmatmul.mubr.msk.f32.vlgmr.msra.gmra.mxu1 %vm693_vm1, %v669_v42 }
 0x2a3   :  { %v763_v44 = vpop.f32.mrf.mxu1 }
 0x2a4   :  { %v764_v45 = vadd.f32 %v798_v43, %v763_v44 }
 0x2a5   :  { %v1373_v46 = vpop.f32.mrf.mxu1 }
 0x2a6   :  { %v768_v53 = vsel %vm767_vm2, %v764_v45, -inf }
 0x2a7   :  { %769 = vmax.xlane.f32.xlu0 %v768_v53 }
 0x330   :  { %v770_v47 = vpop.xlane.xlu0 %769 }
 0x331   :  { %v771_v48 = vsub.f32 %v764_v45, %v770_v47 }
 0x333   :  { %v772_v49 = vmul.f32 1.442695, %v771_v48 }
 0x335   :  { %1380 = vpow2.f32 %v772_v49 }
 0x342   :  { %v1381_v50 = vpop.eup %1380 }
 0x343   :  { %v774_v51 = vsel %vm767_vm2, %v1381_v50, 0.0 }
 0x344   :  { %775 = vadd.xlane.f32.xlu0 %v774_v51 }
 0x3cd   :  { %v776_v52 = vpop.xlane.xlu0 %775 }
 0x3ce   :  { %1382 = vlog2.f32 %v776_v52 }
 0x3db   :  { %v1383_v54 = vpop.eup %1382 }
 0x3dc   :  { %v778_v55 = vmul.f32 0.6931472, %v1383_v54 }
 0x3de   :  { %v779_v56 = vsub.f32 %v771_v48, %v778_v55 }
 0x3e0   :  { %780 = vst.msk [vmem:[#allocation5] sm:$0xff] %vm767_vm2, %v779_v56 }
 0x3e1   :  { %1415 = shalt.err (!%p1412_p9)
}
 0x3e2   :  { %790 = dma.vmem_to_hbm [thread:$0]  %s788_s6, 128, %s1599_s7, [#allocation4]  }
 0x3e3   :  { %1426 = dma.done.wait [#allocation4], 128  }
 0x3e4   :  { %1427 = vsyncadd [#allocation4], 4294967168 }
 0x3e5   :  { %794 = vsyncpa [#allocation3], 1 }
 0x3e6   :  { %795 = vsyncpa [#allocation4], 1 }

</bundles_post_ra>
